<compile_context>
chip_gen: v5e
topology: v5e:2x2
jax: 0.10.0
libtpu: 0.0.40
codegen_flags: <defaults>
</compile_context>

<pallas_src>
import math
import jax
import jax.numpy as jnp
from jax.experimental import pallas as pl
from jax.experimental.pallas import tpu as pltpu

EPS = 1e-5
_VMEM_LIMIT_BYTES = 32 * 1024 * 1024   # safe on v5e/v6e (128 MiB) and v7x (64 MiB)


# ---------------------------------------------------------------------------
# Pallas kernels.  grid = (N,): one batch element per program ("parallel").
# Activations inside a block are (C, L): C on sublanes, L on lanes.
# ---------------------------------------------------------------------------
def _pass1_kernel(xcol_ref, x_ref, w1_ref, ws_ref,
                  y1_ref, ys_ref, s1_ref, q1_ref, ss_ref, qs_ref):
    """conv1 + shortcut 1x1 conv as single matmuls + partial BN stats."""
    # xcol: (1, K*Cin, L) bf16   x: (1, Cin, L) bf16
    # w1:   (Cout, K*Cin) bf16   ws: (Cout, Cin) bf16
    y1 = jnp.dot(w1_ref[...], xcol_ref[0], preferred_element_type=jnp.float32)
    ys = jnp.dot(ws_ref[...], x_ref[0], preferred_element_type=jnp.float32)
    y1_ref[0] = y1
    ys_ref[0] = ys
    # per-block partial sums / sums-of-squares (reduced over N in the wrapper)
    s1_ref[0] = jnp.sum(y1, axis=1, keepdims=True)
    q1_ref[0] = jnp.sum(y1 * y1, axis=1, keepdims=True)
    ss_ref[0] = jnp.sum(ys, axis=1, keepdims=True)
    qs_ref[0] = jnp.sum(ys * ys, axis=1, keepdims=True)


def _pass2_kernel(y1col_ref, w2_ref, sc1_ref, sh1_ref, mask_ref,
                  y2_ref, s2_ref, q2_ref):
    """bn1 (folded scale/shift) + ReLU fused on the im2col'd conv1 output,
    then conv2 as one matmul + partial bn2 stats."""
    # y1col: (1, K*Cout, L) f32 ; sc1/sh1: (K*Cout, 1) f32 ; mask: (K*Cout, L)
    h1col = jnp.maximum(y1col_ref[0] * sc1_ref[...] + sh1_ref[...], 0.0)
    h1col = h1col * mask_ref[...]            # re-zero the conv-padding taps
    y2 = jnp.dot(w2_ref[...], h1col.astype(w2_ref.dtype),
                 preferred_element_type=jnp.float32)
    y2_ref[0] = y2
    s2_ref[0] = jnp.sum(y2, axis=1, keepdims=True)
    q2_ref[0] = jnp.sum(y2 * y2, axis=1, keepdims=True)


def _pass3_kernel(y2_ref, ys_ref, sc2_ref, sh2_ref, scs_ref, shs_ref, out_ref):
    """bn2 + bn_shortcut (folded) + residual add + final ReLU."""
    out_ref[0] = jnp.maximum(
        y2_ref[0] * sc2_ref[...] + sh2_ref[...]
        + ys_ref[0] * scs_ref[...] + shs_ref[...], 0.0)


# ---------------------------------------------------------------------------
# Wrapper glue (layout only) + the three pallas_calls.
# ---------------------------------------------------------------------------
def _im2col_l(a, K, pad):
    """(N, C, L) -> (N, K*C, L): row k*C+c at position l holds a[n, c, l+k-pad]
    (zero-padded), matching the weight packing w_col[o, k*C+c] = w[o, c, k]."""
    _, _, L = a.shape
    ap = jnp.pad(a, ((0, 0), (0, 0), (pad, pad)))
    return jnp.concatenate([ap[:, :, k:k + L] for k in range(K)], axis=1)


def _fold_bn(total, total_sq, gamma, beta, count):
    """Training-mode BN folded into per-channel scale/shift. Inputs: (Cout,1)."""
    mean = total / count
    var = total_sq / count - mean * mean            # biased variance
    scale = gamma.reshape(-1, 1).astype(jnp.float32) * jax.lax.rsqrt(var + EPS)
    shift = beta.reshape(-1, 1).astype(jnp.float32) - mean * scale
    return scale, shift


def residual_block_forward(x_ncl, w1, w2, ws, g1, b1, g2, b2, gs, bs,
                           kernel_size=3, matmul_dtype=jnp.bfloat16):
    """x_ncl: (N, Cin, L).  PyTorch weight layouts: w1 (Cout, Cin, K),
    w2 (Cout, Cout, K), ws (Cout, Cin, 1) (projection shortcut, Cin != Cout).
    Returns (N, Cout, L) float32."""
    N, Cin, L = x_ncl.shape
    Cout = w1.shape[0]
    K = kernel_size
    pad = K // 2
    count = jnp.float32(N * L)

    # ---- glue (layout only): im2col view of x + weight packing -------------
    x_md = x_ncl.astype(matmul_dtype)
    xcol = _im2col_l(x_md, K, pad)                                   # (N, K*Cin, L)
    w1_col = jnp.transpose(w1, (0, 2, 1)).reshape(Cout, K * Cin).astype(matmul_dtype)
    w2_col = jnp.transpose(w2, (0, 2, 1)).reshape(Cout, K * Cout).astype(matmul_dtype)
    ws_mat = ws[:, :, 0].astype(matmul_dtype)                        # (Cout, Cin)

    cparams = pltpu.CompilerParams(dimension_semantics=("parallel",),
                                   vmem_limit_bytes=_VMEM_LIMIT_BYTES)
    itemsize = jnp.dtype(matmul_dtype).itemsize

    act_spec = pl.BlockSpec((1, Cout, L), lambda n: (n, 0, 0))
    stat_spec = pl.BlockSpec((1, Cout, 1), lambda n: (n, 0, 0))
    act_f32 = jax.ShapeDtypeStruct((N, Cout, L), jnp.float32)
    stat_f32 = jax.ShapeDtypeStruct((N, Cout, 1), jnp.float32)

    # ---- pass 1: conv1 + shortcut conv + partial bn1 / bn_s stats ----------
    y1, ys, s1, q1, ss, qs = pl.pallas_call(
        _pass1_kernel,
        grid=(N,),
        in_specs=[
            pl.BlockSpec((1, K * Cin, L), lambda n: (n, 0, 0)),
            pl.BlockSpec((1, Cin, L), lambda n: (n, 0, 0)),
            pl.BlockSpec((Cout, K * Cin), lambda n: (0, 0)),
            pl.BlockSpec((Cout, Cin), lambda n: (0, 0)),
        ],
        out_specs=(act_spec, act_spec, stat_spec, stat_spec, stat_spec, stat_spec),
        out_shape=(act_f32, act_f32, stat_f32, stat_f32, stat_f32, stat_f32),
        compiler_params=cparams,
        cost_estimate=pl.CostEstimate(
            flops=2 * N * L * Cout * (K * Cin + Cin),
            transcendentals=0,
            bytes_accessed=(xcol.size + x_md.size) * itemsize
                           + 2 * N * Cout * L * 4),
    )(xcol, x_md, w1_col, ws_mat)

    # ---- fold bn1 / bn_shortcut into per-channel scale & shift -------------
    scale1, shift1 = _fold_bn(jnp.sum(s1, 0), jnp.sum(q1, 0), g1, b1, count)
    scale_s, shift_s = _fold_bn(jnp.sum(ss, 0), jnp.sum(qs, 0), gs, bs, count)

    # bn1 + ReLU are pointwise, so they commute with im2col: apply them inside
    # pass 2 on the im2col'd conv1 output (scale/shift tiled over the K taps);
    # the 0/1 mask re-zeroes im2col positions that correspond to conv padding.
    y1col = _im2col_l(y1, K, pad)                                    # (N, K*Cout, L)
    sc1_rep = jnp.tile(scale1, (K, 1))                               # (K*Cout, 1)
    sh1_rep = jnp.tile(shift1, (K, 1))
    tap = jnp.repeat(jnp.arange(K), Cout).reshape(K * Cout, 1)
    pos = jnp.arange(L).reshape(1, L) + tap - pad
    pad_mask = ((pos >= 0) & (pos < L)).astype(jnp.float32)          # (K*Cout, L)

    vec_spec = pl.BlockSpec((K * Cout, 1), lambda n: (0, 0))
    y2, s2, q2 = pl.pallas_call(
        _pass2_kernel,
        grid=(N,),
        in_specs=[
            pl.BlockSpec((1, K * Cout, L), lambda n: (n, 0, 0)),
            pl.BlockSpec((Cout, K * Cout), lambda n: (0, 0)),
            vec_spec, vec_spec,
            pl.BlockSpec((K * Cout, L), lambda n: (0, 0)),
        ],
        out_specs=(act_spec, stat_spec, stat_spec),
        out_shape=(act_f32, stat_f32, stat_f32),
        compiler_params=cparams,
        cost_estimate=pl.CostEstimate(
            flops=2 * N * L * Cout * (K * Cout) + 4 * N * K * Cout * L,
            transcendentals=0,
            bytes_accessed=y1col.size * 4 + N * Cout * L * 4),
    )(y1col, w2_col, sc1_rep, sh1_rep, pad_mask)

    # ---- fold bn2; final fused bn2 + bn_s + residual add + ReLU -------------
    scale2, shift2 = _fold_bn(jnp.sum(s2, 0), jnp.sum(q2, 0), g2, b2, count)

    chan_spec = pl.BlockSpec((Cout, 1), lambda n: (0, 0))
    out = pl.pallas_call(
        _pass3_kernel,
        grid=(N,),
        in_specs=[act_spec, act_spec, chan_spec, chan_spec, chan_spec, chan_spec],
        out_specs=act_spec,
        out_shape=act_f32,
        compiler_params=cparams,
        cost_estimate=pl.CostEstimate(
            flops=7 * N * Cout * L,
            transcendentals=0,
            bytes_accessed=3 * N * Cout * L * 4),
    )(y2, ys, scale2, shift2, scale_s, shift_s)
    return out


# ---------------------------------------------------------------------------
# Pure-JAX reference (NCL), mirrors the PyTorch ResidualBlock forward.
# ---------------------------------------------------------------------------
def _reference(x, w1, w2, ws):
    def conv1d(x, w, pad):
        return jax.lax.conv_general_dilated(
            x, w, window_strides=(1,), padding=[(pad, pad)],
            dimension_numbers=('NCH', 'OIH', 'NCH'))

    def bn(h):  # training-mode, gamma=1, beta=0, biased variance
        mean = jnp.mean(h, axis=(0, 2), keepdims=True)
        var = jnp.mean((h - mean) ** 2, axis=(0, 2), keepdims=True)
        return (h - mean) * jax.lax.rsqrt(var + EPS)

    res = bn(conv1d(x, ws, 0))
    h = jnp.maximum(bn(conv1d(x, w1, 1)), 0.0)
    h = bn(conv1d(h, w2, 1))
    return jnp.maximum(h + res, 0.0)


if __name__ == "__main__":
    N, C_in, C_out, L, K = 2, 4, 8, 16, 3

    key = jax.random.PRNGKey(0)
    kx, k1, k2, k3 = jax.random.split(key, 4)

    x = jax.random.normal(kx, (N, C_in, L), jnp.float32)

    # kaiming_normal_(mode='fan_out', nonlinearity='relu'): std = sqrt(2/(Cout*K))
    w1 = jax.random.normal(k1, (C_out, C_in, K), jnp.float32) * math.sqrt(2.0 / (C_out * K))
    w2 = jax.random.normal(k2, (C_out, C_out, K), jnp.float32) * math.sqrt(2.0 / (C_out * K))
    ws = jax.random.normal(k3, (C_out, C_in, 1), jnp.float32) * math.sqrt(2.0 / (C_out * 1))

    # BatchNorm1d params: weight=1, bias=0
    g1 = jnp.ones((C_out,), jnp.float32); b1 = jnp.zeros((C_out,), jnp.float32)
    g2 = jnp.ones((C_out,), jnp.float32); b2 = jnp.zeros((C_out,), jnp.float32)
    gs = jnp.ones((C_out,), jnp.float32); bs = jnp.zeros((C_out,), jnp.float32)

    out = residual_block_forward(x, w1, w2, ws, g1, b1, g2, b2, gs, bs,
                                 kernel_size=K)
    out = jax.block_until_ready(out)

    ref = jax.block_until_ready(_reference(x, w1, w2, ws))
    assert out.shape == (N, C_out, L)
    max_err = float(jnp.max(jnp.abs(out - ref)))
    rel_l2 = float(jnp.linalg.norm(out - ref) / (jnp.linalg.norm(ref) + 1e-12))
    # bf16 MXU inputs (f32 accumulation) => ~1e-2-scale deviations vs f32 ref
    assert max_err < 1.5e-1 and rel_l2 < 5e-2, (max_err, rel_l2)

    print("KERNEL_OK")
</pallas_src>

<mosaic_0001>
module attributes {stable_mosaic.version = 11 : i64} {
  func.func @_pass1_kernel(%arg0: i32, %arg1: memref<1x12x16xbf16, #tpu.memory_space<vmem>>, %arg2: memref<1x4x16xbf16, #tpu.memory_space<vmem>>, %arg3: memref<8x12xbf16, #tpu.memory_space<vmem>>, %arg4: memref<8x4xbf16, #tpu.memory_space<vmem>>, %arg5: memref<1x8x16xf32, #tpu.memory_space<vmem>>, %arg6: memref<1x8x16xf32, #tpu.memory_space<vmem>>, %arg7: memref<1x8x1xf32, #tpu.memory_space<vmem>>, %arg8: memref<1x8x1xf32, #tpu.memory_space<vmem>>, %arg9: memref<1x8x1xf32, #tpu.memory_space<vmem>>, %arg10: memref<1x8x1xf32, #tpu.memory_space<vmem>>) attributes {dimension_semantics = [#tpu.dimension_semantics<parallel>], iteration_bounds = array<i64: 2>, scalar_prefetch = 0 : i64, scratch_operands = 0 : i64, tpu.core_type = #tpu.core_type<tc>, window_params = [{transform_indices = @transform_0, window_bounds = array<i64: 1, 12, 16>}, {transform_indices = @transform_1, window_bounds = array<i64: 1, 4, 16>}, {pipeline_mode = #tpu.pipeline_mode<synchronous>, transform_indices = @transform_2, window_bounds = array<i64: 8, 12>}, {pipeline_mode = #tpu.pipeline_mode<synchronous>, transform_indices = @transform_3, window_bounds = array<i64: 8, 4>}, {transform_indices = @transform_4, window_bounds = array<i64: 1, 8, 16>}, {transform_indices = @transform_5, window_bounds = array<i64: 1, 8, 16>}, {transform_indices = @transform_6, window_bounds = array<i64: 1, 8, 1>}, {transform_indices = @transform_7, window_bounds = array<i64: 1, 8, 1>}, {transform_indices = @transform_8, window_bounds = array<i64: 1, 8, 1>}, {transform_indices = @transform_9, window_bounds = array<i64: 1, 8, 1>}]} {
    %c0 = arith.constant 0 : index
    %c0_0 = arith.constant 0 : index
    %0 = vector.load %arg3[%c0, %c0_0] : memref<8x12xbf16, #tpu.memory_space<vmem>>, vector<8x12xbf16>
    %c0_1 = arith.constant 0 : index
    %c0_2 = arith.constant 0 : index
    %c0_3 = arith.constant 0 : index
    %1 = vector.load %arg1[%c0_1, %c0_2, %c0_3] : memref<1x12x16xbf16, #tpu.memory_space<vmem>>, vector<1x12x16xbf16>
    %2 = vector.shape_cast %1 : vector<1x12x16xbf16> to vector<12x16xbf16>
    %cst = arith.constant dense<0.000000e+00> : vector<8x16xf32>
    %3 = tpu.matmul %0, %2, %cst {dimension_numbers = #tpu.dot_dimension_numbers<[1], [0], [0], [1], [0, 0, 1, 1], [], []>} : vector<8x12xbf16>, vector<12x16xbf16>, vector<8x16xf32> -> vector<8x16xf32>
    %c0_4 = arith.constant 0 : index
    %c0_5 = arith.constant 0 : index
    %4 = vector.load %arg4[%c0_4, %c0_5] : memref<8x4xbf16, #tpu.memory_space<vmem>>, vector<8x4xbf16>
    %c0_6 = arith.constant 0 : index
    %c0_7 = arith.constant 0 : index
    %c0_8 = arith.constant 0 : index
    %5 = vector.load %arg2[%c0_6, %c0_7, %c0_8] : memref<1x4x16xbf16, #tpu.memory_space<vmem>>, vector<1x4x16xbf16>
    %6 = vector.shape_cast %5 : vector<1x4x16xbf16> to vector<4x16xbf16>
    %cst_9 = arith.constant dense<0.000000e+00> : vector<8x16xf32>
    %7 = tpu.matmul %4, %6, %cst_9 {dimension_numbers = #tpu.dot_dimension_numbers<[1], [0], [0], [1], [0, 0, 1, 1], [], []>} : vector<8x4xbf16>, vector<4x16xbf16>, vector<8x16xf32> -> vector<8x16xf32>
    %c0_10 = arith.constant 0 : index
    %c0_11 = arith.constant 0 : index
    %c0_12 = arith.constant 0 : index
    %8 = vector.load %arg5[%c0_10, %c0_11, %c0_12] : memref<1x8x16xf32, #tpu.memory_space<vmem>>, vector<1x8x16xf32>
    %9 = vector.shape_cast %8 : vector<1x8x16xf32> to vector<8x16xf32>
    %10 = vector.shape_cast %3 : vector<8x16xf32> to vector<1x8x16xf32>
    tpu.vector_store %arg5[%c0_10, %c0_11, %c0_12], %10 {strides = array<i32>} : memref<1x8x16xf32, #tpu.memory_space<vmem>>, vector<1x8x16xf32>,
    %c0_13 = arith.constant 0 : index
    %c0_14 = arith.constant 0 : index
    %c0_15 = arith.constant 0 : index
    %11 = vector.load %arg6[%c0_13, %c0_14, %c0_15] : memref<1x8x16xf32, #tpu.memory_space<vmem>>, vector<1x8x16xf32>
    %12 = vector.shape_cast %11 : vector<1x8x16xf32> to vector<8x16xf32>
    %13 = vector.shape_cast %7 : vector<8x16xf32> to vector<1x8x16xf32>
    tpu.vector_store %arg6[%c0_13, %c0_14, %c0_15], %13 {strides = array<i32>} : memref<1x8x16xf32, #tpu.memory_space<vmem>>, vector<1x8x16xf32>,
    %cst_16 = arith.constant dense<0.000000e+00> : vector<8xf32>
    %14 = vector.multi_reduction <add>, %3, %cst_16 [1] : vector<8x16xf32> to vector<8xf32>
    %15 = vector.shape_cast %14 : vector<8xf32> to vector<8x1xf32>
    %c0_17 = arith.constant 0 : index
    %c0_18 = arith.constant 0 : index
    %c0_19 = arith.constant 0 : index
    %16 = vector.load %arg7[%c0_17, %c0_18, %c0_19] : memref<1x8x1xf32, #tpu.memory_space<vmem>>, vector<1x8x1xf32>
    %17 = vector.shape_cast %16 : vector<1x8x1xf32> to vector<8x1xf32>
    %18 = vector.shape_cast %15 : vector<8x1xf32> to vector<1x8x1xf32>
    tpu.vector_store %arg7[%c0_17, %c0_18, %c0_19], %18 {strides = array<i32>} : memref<1x8x1xf32, #tpu.memory_space<vmem>>, vector<1x8x1xf32>,
    %19 = arith.mulf %3, %3 : vector<8x16xf32>
    %cst_20 = arith.constant dense<0.000000e+00> : vector<8xf32>
    %20 = vector.multi_reduction <add>, %19, %cst_20 [1] : vector<8x16xf32> to vector<8xf32>
    %21 = vector.shape_cast %20 : vector<8xf32> to vector<8x1xf32>
    %c0_21 = arith.constant 0 : index
    %c0_22 = arith.constant 0 : index
    %c0_23 = arith.constant 0 : index
    %22 = vector.load %arg8[%c0_21, %c0_22, %c0_23] : memref<1x8x1xf32, #tpu.memory_space<vmem>>, vector<1x8x1xf32>
    %23 = vector.shape_cast %22 : vector<1x8x1xf32> to vector<8x1xf32>
    %24 = vector.shape_cast %21 : vector<8x1xf32> to vector<1x8x1xf32>
    tpu.vector_store %arg8[%c0_21, %c0_22, %c0_23], %24 {strides = array<i32>} : memref<1x8x1xf32, #tpu.memory_space<vmem>>, vector<1x8x1xf32>,
    %cst_24 = arith.constant dense<0.000000e+00> : vector<8xf32>
    %25 = vector.multi_reduction <add>, %7, %cst_24 [1] : vector<8x16xf32> to vector<8xf32>
    %26 = vector.shape_cast %25 : vector<8xf32> to vector<8x1xf32>
    %c0_25 = arith.constant 0 : index
    %c0_26 = arith.constant 0 : index
    %c0_27 = arith.constant 0 : index
    %27 = vector.load %arg9[%c0_25, %c0_26, %c0_27] : memref<1x8x1xf32, #tpu.memory_space<vmem>>, vector<1x8x1xf32>
    %28 = vector.shape_cast %27 : vector<1x8x1xf32> to vector<8x1xf32>
    %29 = vector.shape_cast %26 : vector<8x1xf32> to vector<1x8x1xf32>
    tpu.vector_store %arg9[%c0_25, %c0_26, %c0_27], %29 {strides = array<i32>} : memref<1x8x1xf32, #tpu.memory_space<vmem>>, vector<1x8x1xf32>,
    %30 = arith.mulf %7, %7 : vector<8x16xf32>
    %cst_28 = arith.constant dense<0.000000e+00> : vector<8xf32>
    %31 = vector.multi_reduction <add>, %30, %cst_28 [1] : vector<8x16xf32> to vector<8xf32>
    %32 = vector.shape_cast %31 : vector<8xf32> to vector<8x1xf32>
    %c0_29 = arith.constant 0 : index
    %c0_30 = arith.constant 0 : index
    %c0_31 = arith.constant 0 : index
    %33 = vector.load %arg10[%c0_29, %c0_30, %c0_31] : memref<1x8x1xf32, #tpu.memory_space<vmem>>, vector<1x8x1xf32>
    %34 = vector.shape_cast %33 : vector<1x8x1xf32> to vector<8x1xf32>
    %35 = vector.shape_cast %32 : vector<8x1xf32> to vector<1x8x1xf32>
    tpu.vector_store %arg10[%c0_29, %c0_30, %c0_31], %35 {strides = array<i32>} : memref<1x8x1xf32, #tpu.memory_space<vmem>>, vector<1x8x1xf32>,
    return
  }
  func.func @transform_0(%arg0: i32) -> (i32, i32, i32) {
    %c0_i32 = arith.constant 0 : i32
    %c0_i32_0 = arith.constant 0 : i32
    %c0_i32_1 = arith.constant 0 : i32
    return %arg0, %c0_i32, %c0_i32_0 : i32, i32, i32
  }
  func.func @transform_1(%arg0: i32) -> (i32, i32, i32) {
    %c0_i32 = arith.constant 0 : i32
    %c0_i32_0 = arith.constant 0 : i32
    %c0_i32_1 = arith.constant 0 : i32
    return %arg0, %c0_i32, %c0_i32_0 : i32, i32, i32
  }
  func.func @transform_2(%arg0: i32) -> (i32, i32) {
    %c0_i32 = arith.constant 0 : i32
    %c0_i32_0 = arith.constant 0 : i32
    %c0_i32_1 = arith.constant 0 : i32
    return %c0_i32, %c0_i32_0 : i32, i32
  }
  func.func @transform_3(%arg0: i32) -> (i32, i32) {
    %c0_i32 = arith.constant 0 : i32
    %c0_i32_0 = arith.constant 0 : i32
    %c0_i32_1 = arith.constant 0 : i32
    return %c0_i32, %c0_i32_0 : i32, i32
  }
  func.func @transform_4(%arg0: i32) -> (i32, i32, i32) {
    %c0_i32 = arith.constant 0 : i32
    %c0_i32_0 = arith.constant 0 : i32
    %c0_i32_1 = arith.constant 0 : i32
    return %arg0, %c0_i32, %c0_i32_0 : i32, i32, i32
  }
  func.func @transform_5(%arg0: i32) -> (i32, i32, i32) {
    %c0_i32 = arith.constant 0 : i32
    %c0_i32_0 = arith.constant 0 : i32
    %c0_i32_1 = arith.constant 0 : i32
    return %arg0, %c0_i32, %c0_i32_0 : i32, i32, i32
  }
  func.func @transform_6(%arg0: i32) -> (i32, i32, i32) {
    %c0_i32 = arith.constant 0 : i32
    %c0_i32_0 = arith.constant 0 : i32
    %c0_i32_1 = arith.constant 0 : i32
    return %arg0, %c0_i32, %c0_i32_0 : i32, i32, i32
  }
  func.func @transform_7(%arg0: i32) -> (i32, i32, i32) {
    %c0_i32 = arith.constant 0 : i32
    %c0_i32_0 = arith.constant 0 : i32
    %c0_i32_1 = arith.constant 0 : i32
    return %arg0, %c0_i32, %c0_i32_0 : i32, i32, i32
  }
  func.func @transform_8(%arg0: i32) -> (i32, i32, i32) {
    %c0_i32 = arith.constant 0 : i32
    %c0_i32_0 = arith.constant 0 : i32
    %c0_i32_1 = arith.constant 0 : i32
    return %arg0, %c0_i32, %c0_i32_0 : i32, i32, i32
  }
  func.func @transform_9(%arg0: i32) -> (i32, i32, i32) {
    %c0_i32 = arith.constant 0 : i32
    %c0_i32_0 = arith.constant 0 : i32
    %c0_i32_1 = arith.constant 0 : i32
    return %arg0, %c0_i32, %c0_i32_0 : i32, i32, i32
  }
}

</mosaic_0001>

<bundles_post_ra>
// kernel: tpu_custom_call.1
= control target key start
LH: loop header
LB: loop body
LE: loop exit
PB: predicated region body
PF: predicated region fallthrough
CT: control target
= control target key end

     0   :  { %s1101_s0 = inlined_call_operand.vmem [shape: bf16[2,12,16], index: 0, kind: input, shape index: {}]   ;;  %s1102_s1 = inlined_call_operand.vmem [shape: bf16[2,4,16], index: 1, kind: input, shape index: {}]   ;;  %s1103_s2 = inlined_call_operand.vmem [shape: bf16[8,12], index: 2, kind: input, shape index: {}]   ;;  %s1104_s3 = inlined_call_operand.vmem [shape: bf16[8,4], index: 3, kind: input, shape index: {}]   ;;  %s1105_s4 = inlined_call_operand.hbm [shape: f32[2,8,16], index: 4, kind: output, shape index: {0}]   ;;  %s1106_s5 = inlined_call_operand.hbm [shape: f32[2,8,16], index: 5, kind: output, shape index: {1}]   ;;  %s1107_s6 = inlined_call_operand.vmem [shape: f32[2,8,1], index: 6, kind: output, shape index: {2}]   ;;  %s1108_s7 = inlined_call_operand.vmem [shape: f32[2,8,1], index: 7, kind: output, shape index: {3}]   ;;  %s1109_s8 = inlined_call_operand.vmem [shape: f32[2,8,1], index: 8, kind: output, shape index: {4}]   ;;  %s1110_s9 = inlined_call_operand.vmem [shape: f32[2,8,1], index: 9, kind: output, shape index: {5}]  }
   0x1   :  { %1111 = sst [smem:[#allocation8_spill]] %s1101_s0 }
   0x2   :  { %1112 = sst [smem:[#allocation9_spill]] %s1102_s1 }
   0x3   :  { %1113 = sst [smem:[#allocation10_spill]] %s1103_s2 }
   0x4   :  { %15 = vsyncpa [#allocation3], 0 }
   0x5   :  { %17 = vsyncpa [#allocation3 + $0x1], 0 }
   0x6   :  { %18 = vsyncpa [#allocation5], 0 }
   0x7   :  { %20 = vsyncpa [#allocation5 + $0x1], 0  ;;  %s954_s30 = smov 0   ;;  %s956_s10 = smov 0  }
   0x8   :  { %s958_s11 = smov 0   ;;  %s960_s12 = smov 0  }
   0x9 LB: > { %s975_s13 = sadd.s32 4294967295, %s902_s12   ;;  %s737_s14 = sadd.s32 4294967294, %s902_s12   ;;  %s902_s12 = sphi %s960_s12, %s1122_s12   ;;  %s898_s11 = sphi %s958_s11, %s1121_s11   ;;  %s894_s10 = sphi %s956_s10, %s1120_s10   ;;  %s890_s30 = sphi %s954_s30, %s1119_s30  }
   0xa   : > { %s979_s15 = sadd.s32 1, %s902_s12   ;;  %s127_s16 = sadd.s32 1, %s898_s11 }
   0xb   : > { %s124_s17 = ssub.s32 %s902_s12, %s979_s15  ;;  %p137_p0 = scmp.ne.s32.totalorder %s898_s11, %s894_s10 }
   0xc   : > { %p125_p1 = scmp.eq.s32.totalorder %s124_s17, 0  ;;  %p138_p2 = scmp.eq.s32.totalorder %s975_s13, 1 }
   0xd   : > { %p143_p3 = scmp.ne.s32.totalorder %s894_s10, %s890_s30  ;;  %p144_p4 = scmp.eq.s32.totalorder %s737_s14, 1 }
   0xe   : > { %s990_s18 = scalar_select %p125_p1, %s898_s11, %s127_s16  }
   0xf   : > { %p992_p5 = por %p138_p2, %p137_p0  ;;  %p996_p6 = por %p144_p4, %p143_p3 }
  0x10   : > { %p740_p7 = scmp.ge.s32.totalorder %s902_s12, 1  ;;  %p313_p8 = scmp.lt.s32.totalorder %s902_s12, 3 }
  0x12   : > { %p314_p9 = pnand %p740_p7, %p313_p8 }
  0x13   : > { %p374_p10 = scmp.lt.s32.totalorder (!%p314_p9), %s975_s13, 1  ;;  %s1116_s1 = sld [smem:[#allocation9_spill]] (!%p314_p9) }
  0x14   : > { %317 = sbr.rel (%p314_p9) target bundleno = 298 (0x12a), region = 36  ;;  %s1117_s0 = sld [smem:[#allocation8_spill]] (!%p314_p9) }
  0x15   : > { %s1118_s2 = sld [smem:[#allocation10_spill]] (!%p314_p9)  ;;  %s758_s25 = sshll.u32 (!%p314_p9), %s975_s13, 3 }
  0x16   : > { %s506_s28 = scalar_lea.hbm (!%p314_p9), %s1105_s4, %s758_s25 }
  0x17   : > { %s510_s16 = sshll.u32 (!%p314_p9), %s506_s28, 4  ;;  %s511_s16 = int_to_ptr.hbm [resolvable:$true] %s510_s16 }
  0x18   : > { %s822_s28 = sshra.s32 (!%p314_p9), %s511_s16, 4  ;;  %s823_s28 = int_to_ptr.hbm [resolvable:$true] %s822_s28 }
  0x19   : > { %s375_s21 = scalar_select %p374_p10, %s975_s13, 1  ;;  %vm435_vm0 = vcmask 1041408   ;;  %vm412_vm1 = vcmask 1045504   ;;  %v429_v5 = vld [vmem:[%s1104_s3] sm:$0xf]  ;;  %vm431_vm2 = vcmask 31744  }
  0x1a   : > { %vm408_vm3 = vcmask 97280   ;;  %vm452_vm4 = vcmask 130048   ;;  %p829_p0 = scmp.lt.s32.totalorder %s823_s28, %s1105_s4 }
  0x1b   : > { %s1004_s22 = sshll.u32 %s375_s21, 3  ;;  %s745_s23 = sshll.u32 %s375_s21, 1  ;;  %v400_v7 = vld [vmem:[%s1118_s2] sm:$0xf] }
  0x1c   : > { %s382_s26 = scalar_lea.vmem %s1116_s1, %s745_s23  ;;  %s378_s29 = scalar_lea.vmem %s1117_s0, %s1004_s22 }
  0x1d   : > { %v430_v0 = vld [vmem:[%s382_s26] sm:$0x3]  ;;  %v763_v2 = vld [vmem:[%s378_s29] sm:$0x30]  ;;  %s1020_s23 = sand.u32 1, %s894_s10   ;;  %s520_s26 = scalar_lea.hbm %s1106_s5, %s758_s25 }
  0x1e   : > { %v752_v1 = vld [vmem:[%s378_s29] sm:$0xf]  ;;  %v437_v3 = vsel %vm435_vm0, %v430_v0, 0  ;;  %s741_s24 = sshll.u32 %s1020_s23, 3  ;;  %s524_s0 = sshll.u32 %s520_s26, 4  ;;  %s1038_s0 = int_to_ptr.hbm [resolvable:$true] %s524_s0 }
  0x1f   : > { %v753_v4 = vor.u32 %v763_v2, %v752_v1  ;;  %446 = vmatpush.bf16.msra.mxu1 %v437_v3  ;;  %s342_s29 = scalar_lea.vmem [#allocation2], %s741_s24  ;;  %s349_s17 = scalar_lea.vmem [#allocation4], %s741_s24 }
  0x20   : > { %s508_s14 = sshll.u32 %s342_s29, 4  ;;  %s522_s27 = sshll.u32 %s349_s17, 4  ;;  %s1027_s14 = int_to_ptr.vmem [resolvable:$true] %s508_s14  ;;  %s1036_s27 = int_to_ptr.vmem [resolvable:$true] %s522_s27 }
  0x21   : > { %v414_v6 = vsel %vm412_vm1, %v753_v4, 0  ;;  %s475_s24 = scalar_lea.sflag [#allocation3], %s1020_s23  ;;  %s824_s1 = scalar_lea.hbm %s823_s28, 8 }
  0x22   : > { %423 = vmatpush.bf16.msra.mxu0 %v414_v6  ;;  %755 = vmatmul.msk.bf16.vlgmr.msra.gmra.mxu1 %vm431_vm2, %v429_v5  ;;  %p825_p11 = scmp.ne.s32.totalorder %s823_s28, %s824_s1  ;;  %s828_s21 = scalar_lea.hbm %s1105_s4, 16 }
  0x23   : > { %p830_p1 = scmp.lt.s32.totalorder %s828_s21, %s824_s1 }
  0x24   : > { %p826_p12 = pnand %p825_p11, %p992_p5 }
  0x25   : > { %754 = vmatmul.msk.bf16.vlgmr.msra.gmra.mxu0 %vm408_vm3, %v400_v7  ;;  %p831_p2 = por %p830_p1, %p829_p0 }
  0x26   : > { %p827_p13 = pneg %p826_p12 }
  0x28   : > { %p832_p3 = pnand %p831_p2, %p827_p13 }
  0x9f   : > { %v448_v8 = vpop.f32.mrf.mxu1 }
  0xa0   : > { %v465_v9 = vsel %vm452_vm4, %v448_v8, 0.0  ;;  %454 = vst.msk [vmem:[%s349_s17] sm:$0xff] %vm452_vm4, %v448_v8 }
  0xa1   : > { %466 = vadd.xlane.f32.xlu1 %v465_v9 }
  0xa2   : > { %v425_v10 = vpop.f32.mrf.mxu0 }
  0xa3   : > { %v455_v11 = vsel %vm452_vm4, %v425_v10, 0.0  ;;  %453 = vst.msk [vmem:[%s342_s29] sm:$0xff] %vm452_vm4, %v425_v10 }
  0xa4   : > { %456 = vadd.xlane.f32.xlu0 %v455_v11 }
  0xa5   : > { %835 = shalt.err (!%p832_p3)
}
  0xa6   : > { %764 = dma.vmem_to_hbm [thread:$0]  (%p992_p5), %s1027_s14, 128, %s511_s16, %s475_s24   ;;  %v469_v12 = vmul.f32 %v448_v8, %v448_v8 }
  0xa7   : > { %s480_s29 = scalar_lea.sflag [#allocation5], %s1020_s23  ;;  %s850_s2 = sshra.s32 %s1038_s0, 4  ;;  %s851_s2 = int_to_ptr.hbm [resolvable:$true] %s850_s2 }
  0xa8   : > { %s852_s25 = scalar_lea.hbm %s851_s2, 8  ;;  %s856_s17 = scalar_lea.hbm %s1106_s5, 16 }
  0xa9   : > { %p853_p4 = scmp.ne.s32.totalorder %s851_s2, %s852_s25  ;;  %p857_p9 = scmp.lt.s32.totalorder %s851_s2, %s1106_s5 }
  0xaa   : > { %p858_p10 = scmp.lt.s32.totalorder %s856_s17, %s852_s25 }
  0xab   : > { %p854_p7 = pnand %p853_p4, %p992_p5 }
  0xac   : > { %p859_p11 = por %p858_p10, %p857_p9 }
  0xad   : > { %p855_p8 = pneg %p854_p7 }
  0xaf   : > { %p860_p12 = pnand %p859_p11, %p855_p8 }
  0xb1   : > { %863 = shalt.err (!%p860_p12)
}
  0xb2   : > { %765 = dma.vmem_to_hbm [thread:$0]  (%p992_p5), %s1036_s27, 128, %s1038_s0, %s480_s29   ;;  %v460_v13 = vmul.f32 %v425_v10, %v425_v10  ;;  %v450_v14 = vpop.f32.mrf.mxu1  ;;  %v470_v15 = vsel %vm452_vm4, %v469_v12, 0.0  ;;  %v427_v16 = vpop.f32.mrf.mxu0  ;;  %vm458_vm5 = vcmask 7168  }
  0xb3   : > { %471 = vadd.xlane.f32.xlu1 %v470_v15  ;;  %s394_s19 = scalar_lea.vmem %s1109_s8, %s1004_s22  ;;  %s386_s0 = scalar_lea.vmem %s1107_s6, %s1004_s22 }
  0xb4   : > { %v461_v17 = vsel %vm452_vm4, %v460_v13, 0.0  ;;  %s398_s26 = scalar_lea.vmem %s1110_s9, %s1004_s22  ;;  %s390_s1 = scalar_lea.vmem %s1108_s7, %s1004_s22 }
  0xb5   : > { %462 = vadd.xlane.f32.xlu0 %v461_v17 }
 0x114   : > { %v467_v18 = vpop.xlane.xlu1 %466 }
 0x115   : > { %468 = vst.msk [vmem:[%s394_s19] sm:$0xff] %vm458_vm5, %v467_v18 }
 0x117   : > { %v457_v19 = vpop.xlane.xlu0 %456 }
 0x118   : > { %459 = vst.msk [vmem:[%s386_s0] sm:$0xff] %vm458_vm5, %v457_v19 }
 0x126   : > { %v472_v20 = vpop.xlane.xlu1 %471 }
 0x127   : > { %473 = vst.msk [vmem:[%s398_s26] sm:$0xff] %vm458_vm5, %v472_v20 }
 0x128   : > { %v463_v21 = vpop.xlane.xlu0 %462 }
 0x129   : > { %464 = vst.msk [vmem:[%s390_s1] sm:$0xff] %vm458_vm5, %v463_v21 }
 0x12a PF: > { %p775_p5 = scmp.ge.s32.totalorder %s902_s12, 2  ;;  %s548_s28 = sand.u32 1, %s890_s30  }
 0x12b   : > { %s549_s17 = scalar_lea.sflag [#allocation3], %s548_s28 }
 0x12c   : > { %p769_p13 = pnand %p775_p5, %p996_p6 }
 0x12e   : > { %p770_p0 = pneg %p769_p13 }
 0x130   : > { %881 = dma.done.wait (%p770_p0), %s549_s17, 128  }
 0x131   : > { %883 = vsyncadd (%p770_p0), %s549_s17, 4294967168  ;;  %s559_s21 = scalar_lea.sflag [#allocation5], %s548_s28 }
 0x132   : > { %885 = dma.done.wait (%p770_p0), %s559_s21, 128  }
 0x133   : > { %887 = vsyncadd (%p770_p0), %s559_s21, 4294967168  ;;  %p23_p1 = scmp.ge.s32.totalorder %s979_s15, 4   ;;  %s1119_s30 = smov %s894_s10 }
 0x134   : > { %s1120_s10 = smov %s898_s11  ;;  %s1121_s11 = smov %s990_s18 }
 0x135   : > { %s1122_s12 = smov %s979_s15  ;;  %25 = sbr.rel (!%p23_p1) target bundleno = 9 (0x9), region = 139 }
 0x13a   :  { %593 = vsyncpa [#allocation3], 1 }
 0x13b   :  { %595 = vsyncpa [#allocation3 + $0x1], 1 }
 0x13c   :  { %596 = vsyncpa [#allocation5], 1 }
 0x13d   :  { %598 = vsyncpa [#allocation5 + $0x1], 1 }

</bundles_post_ra>
